<compile_context>
chip_gen: v6e
topology: v6e:2x2x1
jax: 0.10.0
libtpu: 0.0.40
codegen_flags: <defaults>
</compile_context>

<pallas_src>
import jax
import jax.numpy as jnp
from jax.experimental import pallas as pl
from jax.experimental.pallas import tpu as pltpu

LANE = 128            # TPU lane width
SUBLANE = 8           # f32 sublane granularity
MAX_BLOCK_ROWS = 4096  # (4096, 128) f32 = 2 MiB per block

# ---- deterministic parameters (from the module definition) ----
OFF0 = 17.0 + 0.5 * 73 - 0.5 * 7.3     # 49.85
OFF1 = 3.0 + 0.5 * 13.0 - 0.5 * 1.3    # 8.85
SC0, SC1 = 7.3, 1.3
W1_0, W1_1 = 0.1718, 1.1416
B1 = 0.4754
W2_0, W2_1 = 0.4778, 1.9717
B2_0, B2_1 = 1.2091, -0.3104

# Folded affine chain:  h_pre = x0*A0 + x1*A1 + C  (no subtract / divide left)
A0 = W1_0 / SC0
A1 = W1_1 / SC1
C = B1 - OFF0 * A0 - OFF1 * A1


def _fairsquare_kernel(x_ref, o_ref):
    # x_ref / o_ref: (tb, 128) f32.  Lanes alternate features: even lane = x0,
    # odd lane = x1 of the same batch row (pairs never straddle a lane-pair
    # boundary, so the +/-1 circular rolls below never mix different rows).
    x = x_ref[...]
    lane = jax.lax.broadcasted_iota(jnp.int32, x.shape, dimension=1)
    even = (lane & 1) == 0                    # True -> this lane holds feature 0

    a = jnp.where(even, A0, A1)               # folded W1/scale, per lane
    t = x * a
    # Partner value of each pair: for even lanes it's lane i+1, for odd lanes
    # lane i-1.  Circular rolls within the 128-lane row (XLU slot, near-free).
    nbr = jnp.where(even,
                    pltpu.roll(t, 127, 1),    # == roll by -1: brings t[i+1] to i
                    pltpu.roll(t, 1, 1))      # brings t[i-1] to i
    h = jnp.maximum(t + nbr + C, 0.0)         # hidden unit, replicated on both lanes

    w2 = jnp.where(even, W2_0, W2_1)
    b2 = jnp.where(even, B2_0, B2_1)
    o_ref[...] = jnp.maximum(h * w2 + b2, 0.0)   # full-tile unmasked store


def _round_up(a, b):
    return (a + b - 1) // b * b


@jax.jit
def fairsquare_nn_v2h1(x):
    """x: [N, F] (F >= 2) or [F] float array -> [N, 2] float32."""
    x = jnp.atleast_2d(jnp.asarray(x, dtype=jnp.float32))
    n = x.shape[0]

    xf = x[:, :2]                 # no-op when the caller already passes 2 features
    flat = xf.reshape(-1)         # [2N], row-major => interleaved x0,x1,x0,x1,...

    # Rows of 128 lanes needed to hold 2N interleaved values.
    rows = _round_up(pl.cdiv(2 * n, LANE), SUBLANE)
    # Block rows: as large as possible (MiB-scale), but keep >= 2 grid steps
    # when there is enough work so both v7x TensorCores get a share.
    tb = min(MAX_BLOCK_ROWS, max(SUBLANE, _round_up(pl.cdiv(rows, 2), SUBLANE)))
    rows_pad = _round_up(rows, tb)
    flat_pad = rows_pad * LANE

    if flat_pad != 2 * n:
        flat = jnp.pad(flat, (0, flat_pad - 2 * n))   # tail padding only
    xg = flat.reshape(rows_pad, LANE)

    grid = (rows_pad // tb,)

    out = pl.pallas_call(
        _fairsquare_kernel,
        out_shape=jax.ShapeDtypeStruct((rows_pad, LANE), jnp.float32),
        grid_spec=pltpu.PrefetchScalarGridSpec(
            num_scalar_prefetch=0,
            grid=grid,
            in_specs=[pl.BlockSpec((tb, LANE), lambda i: (i, 0))],
            out_specs=pl.BlockSpec((tb, LANE), lambda i: (i, 0)),
        ),
        compiler_params=pltpu.CompilerParams(
            dimension_semantics=("parallel",),
            vmem_limit_bytes=32 * 1024 * 1024,
        ),
        cost_estimate=pl.CostEstimate(
            flops=16 * 2 * int(n),
            transcendentals=0,
            bytes_accessed=8 * 2 * int(n),
        ),
    )(xg)

    # Drop padding; the flat view maps straight back to [N, 2] with no transpose.
    return out.reshape(-1)[: 2 * n].reshape(n, 2)


def _reference(x):
    x = jnp.atleast_2d(jnp.asarray(x, dtype=jnp.float32))[:, :2]
    offset = jnp.array([OFF0, OFF1], dtype=jnp.float32)
    scale = jnp.array([SC0, SC1], dtype=jnp.float32)
    w1 = jnp.array([[W1_0, W1_1]], dtype=jnp.float32)
    b1 = jnp.array([B1], dtype=jnp.float32)
    w2 = jnp.array([[W2_0], [W2_1]], dtype=jnp.float32)
    b2 = jnp.array([B2_0, B2_1], dtype=jnp.float32)
    xn = (x - offset) / scale
    h = jnp.maximum(xn @ w1.T + b1, 0.0)
    return jnp.maximum(h @ w2.T + b2, 0.0)


if __name__ == "__main__":
    key = jax.random.PRNGKey(0)

    # batch=8, 4 input features (only the first 2 are used, as in the module)
    x = jax.random.normal(key, (8, 4), dtype=jnp.float32) * jnp.array(
        [10.0, 3.0, 1.0, 1.0], dtype=jnp.float32) + jnp.array(
        [50.0, 9.0, 0.0, 0.0], dtype=jnp.float32)
    out = jax.block_until_ready(fairsquare_nn_v2h1(x))
    ref = _reference(x)
    assert out.shape == (8, 2), out.shape
    assert jnp.allclose(out, ref, atol=1e-5, rtol=1e-5), (out, ref)

    # batch=200, exactly 2 features: exercises tail padding (2N not tile-aligned)
    key2 = jax.random.PRNGKey(1)
    x2 = jax.random.normal(key2, (200, 2), dtype=jnp.float32) * jnp.array(
        [10.0, 3.0], dtype=jnp.float32) + jnp.array(
        [50.0, 9.0], dtype=jnp.float32)
    out2 = jax.block_until_ready(fairsquare_nn_v2h1(x2))
    ref2 = _reference(x2)
    assert out2.shape == (200, 2), out2.shape
    assert jnp.allclose(out2, ref2, atol=1e-5, rtol=1e-5)

    # batch=1000: exercises a multi-step grid (>= 2 blocks).
    key3 = jax.random.PRNGKey(2)
    x3 = jax.random.normal(key3, (1000, 2), dtype=jnp.float32) * jnp.array(
        [10.0, 3.0], dtype=jnp.float32) + jnp.array(
        [50.0, 9.0], dtype=jnp.float32)
    out3 = jax.block_until_ready(fairsquare_nn_v2h1(x3))
    ref3 = _reference(x3)
    assert out3.shape == (1000, 2), out3.shape
    assert jnp.allclose(out3, ref3, atol=1e-5, rtol=1e-5)

    # 1-D input path (atleast_2d)
    x4 = jnp.array([52.0, 9.5], dtype=jnp.float32)
    out4 = jax.block_until_ready(fairsquare_nn_v2h1(x4))
    assert out4.shape == (1, 2)
    assert jnp.allclose(out4, _reference(x4), atol=1e-5, rtol=1e-5)

    print("KERNEL_OK")
</pallas_src>

<mosaic_0001>
module attributes {stable_mosaic.version = 11 : i64} {
  func.func @_fairsquare_kernel(%arg0: i32, %arg1: memref<8x128xf32, #tpu.memory_space<vmem>>, %arg2: memref<8x128xf32, #tpu.memory_space<vmem>>) attributes {dimension_semantics = [#tpu.dimension_semantics<parallel>], iteration_bounds = array<i64: 1>, scalar_prefetch = 0 : i64, scratch_operands = 0 : i64, tpu.core_type = #tpu.core_type<tc>, window_params = [{transform_indices = @transform_0, window_bounds = array<i64: 8, 128>}, {transform_indices = @transform_1, window_bounds = array<i64: 8, 128>}]} {
    %c0 = arith.constant 0 : index
    %c0_0 = arith.constant 0 : index
    %0 = vector.load %arg1[%c0, %c0_0] : memref<8x128xf32, #tpu.memory_space<vmem>>, vector<8x128xf32>
    %1 = tpu.iota {dimensions = array<i32: 1>} : vector<8x128xi32>
    %c1_i32 = arith.constant 1 : i32
    %2 = vector.broadcast %c1_i32 : i32 to vector<8x128xi32>
    %3 = arith.andi %1, %2 : vector<8x128xi32>
    %c0_i32 = arith.constant 0 : i32
    %4 = vector.broadcast %c0_i32 : i32 to vector<8x128xi32>
    %5 = arith.cmpi eq, %3, %4 : vector<8x128xi32>
    %cst = arith.constant 0.0235342458 : f32
    %cst_1 = arith.constant 0.87815386 : f32
    %6 = vector.broadcast %cst : f32 to vector<8x128xf32>
    %7 = vector.broadcast %cst_1 : f32 to vector<8x128xf32>
    %8 = arith.select %5, %6, %7 : vector<8x128xi1>, vector<8x128xf32>
    %9 = arith.mulf %0, %8 : vector<8x128xf32>
    %c127_i32 = arith.constant 127 : i32
    %10 = tpu.dynamic_rotate %9 by %c127_i32 dim 1 : vector<8x128xf32>, i32 -> vector<8x128xf32>
    %c1_i32_2 = arith.constant 1 : i32
    %11 = tpu.dynamic_rotate %9 by %c1_i32_2 dim 1 : vector<8x128xf32>, i32 -> vector<8x128xf32>
    %12 = arith.select %5, %10, %11 : vector<8x128xi1>, vector<8x128xf32>
    %13 = arith.addf %9, %12 : vector<8x128xf32>
    %cst_3 = arith.constant -8.46944332 : f32
    %14 = vector.broadcast %cst_3 : f32 to vector<8x128xf32>
    %15 = arith.addf %13, %14 : vector<8x128xf32>
    %cst_4 = arith.constant 0.000000e+00 : f32
    %16 = vector.broadcast %cst_4 : f32 to vector<8x128xf32>
    %17 = arith.maximumf %15, %16 : vector<8x128xf32>
    %cst_5 = arith.constant 4.778000e-01 : f32
    %cst_6 = arith.constant 1.971700e+00 : f32
    %18 = vector.broadcast %cst_5 : f32 to vector<8x128xf32>
    %19 = vector.broadcast %cst_6 : f32 to vector<8x128xf32>
    %20 = arith.select %5, %18, %19 : vector<8x128xi1>, vector<8x128xf32>
    %cst_7 = arith.constant 1.209100e+00 : f32
    %cst_8 = arith.constant -3.104000e-01 : f32
    %21 = vector.broadcast %cst_7 : f32 to vector<8x128xf32>
    %22 = vector.broadcast %cst_8 : f32 to vector<8x128xf32>
    %23 = arith.select %5, %21, %22 : vector<8x128xi1>, vector<8x128xf32>
    %24 = arith.mulf %17, %20 : vector<8x128xf32>
    %25 = arith.addf %24, %23 : vector<8x128xf32>
    %cst_9 = arith.constant 0.000000e+00 : f32
    %26 = vector.broadcast %cst_9 : f32 to vector<8x128xf32>
    %27 = arith.maximumf %25, %26 : vector<8x128xf32>
    %c0_10 = arith.constant 0 : index
    %c0_11 = arith.constant 0 : index
    %28 = vector.load %arg2[%c0_10, %c0_11] : memref<8x128xf32, #tpu.memory_space<vmem>>, vector<8x128xf32>
    tpu.vector_store %arg2[%c0_10, %c0_11], %27 {strides = array<i32>} : memref<8x128xf32, #tpu.memory_space<vmem>>, vector<8x128xf32>,
    return
  }
  func.func @transform_0(%arg0: i32) -> (i32, i32) {
    %c0_i32 = arith.constant 0 : i32
    %c0_i32_0 = arith.constant 0 : i32
    return %arg0, %c0_i32 : i32, i32
  }
  func.func @transform_1(%arg0: i32) -> (i32, i32) {
    %c0_i32 = arith.constant 0 : i32
    %c0_i32_0 = arith.constant 0 : i32
    return %arg0, %c0_i32 : i32, i32
  }
}

</mosaic_0001>

<bundles_post_ra>
// kernel: fairsquare_nn_v2h1.1
= control target key start
LH: loop header
LB: loop body
LE: loop exit
PB: predicated region body
PF: predicated region fallthrough
CT: control target
= control target key end

     0   :  { %v9_v0 = vlaneseq  ;;  %v38_v5 = vmov 0.87815386   ;;  %s39_s8 = smov 127   ;;  %s40_s9 = smov 1   ;;  %v41_v13 = vmov 1.9717   ;;  %s71_s0 = inlined_call_operand.vmem [shape: f32[8,128], index: 0, kind: input, shape index: {}]   ;;  %s72_s1 = inlined_call_operand.vmem [shape: f32[8,128], index: 1, kind: output, shape index: {}]  }
   0x1   :  { %v8_v3 = vld [vmem:[%s71_s0] sm:$0xff]  ;;  %v42_v16 = vmov -0.3104  }
   0x2   :  { %v10_v1 = vand.u32 127, %v9_v0 }
   0x4   :  { %v11_v2 = vand.u32 1, %v10_v1 }
   0x6   :  { %vm56_vm0 = vcmp.eq.s32.totalorder %v11_v2, 0 }
   0x7   :  { %v13_v6 = vsel %vm56_vm0, 0.023534246, %v38_v5  ;;  %v23_v14 = vsel %vm56_vm0, 0.4778, %v41_v13  ;;  %v24_v17 = vsel %vm56_vm0, 1.2091, %v42_v16 }
   0x8   :  { %v14_v7 = vmul.f32 %v13_v6, %v8_v3 }
   0xa   :  { %15 = vrot.lane.b32.xlu0 %v14_v7, %s39_s8 }
   0xe   :  { %17 = vrot.lane.b32.xlu0 %v14_v7, %s40_s9 }
  0x7c   :  { %v16_v8 = vpop.permute.xlu0 %15 }
  0x80   :  { %v18_v9 = vpop.permute.xlu0 %17 }
  0x81   :  { %v19_v10 = vsel %vm56_vm0, %v16_v8, %v18_v9 }
  0x82   :  { %v20_v11 = vadd.f32 %v19_v10, %v14_v7 }
  0x84   :  { %v21_v12 = vadd.f32 -8.469443, %v20_v11 }
  0x86   :  { %v22_v15 = vmax.f32 %v21_v12, 0.0 }
  0x88   :  { %v25_v18 = vmul.f32 %v23_v14, %v22_v15 }
  0x8a   :  { %v26_v19 = vadd.f32 %v25_v18, %v24_v17 }
  0x8c   :  { %v27_v20 = vmax.f32 %v26_v19, 0.0 }
  0x8e   :  { %28 = vst [vmem:[%s72_s1] sm:$0xff] %v27_v20 }

</bundles_post_ra>
